<compile_context>
chip_gen: v6e
topology: v6e:2x2x1
jax: 0.10.0
libtpu: 0.0.40
codegen_flags: <defaults>
</compile_context>

<pallas_src>
import functools

import jax
import jax.numpy as jnp
from jax.experimental import pallas as pl
from jax.experimental.pallas import tpu as pltpu


def _round_up(a, b):
    return (a + b - 1) // b * b


def _filter_kernel(xc_ref, xl_ref, xr_ref, w_ref, b_ref, o_ref, buf_ref, *, K, pad, H, TL):
    # xc_ref: (TR, TL)  center sequence tile (lanes already include replicate pad)
    # xl_ref: (TR, H)   left halo (H >= pad lanes immediately left of center)
    # xr_ref: (TR, H)   right halo (H lanes immediately right of center)
    # w_ref:  (TR, K)   per-row depthwise taps
    # b_ref:  (TR, 1)   per-row bias
    # o_ref:  (TR, TL)  output tile
    # buf_ref:(TR, H+TL+H) VMEM scratch holding the contiguous window
    TR = o_ref.shape[0]

    # Assemble the contiguous halo window in f32 (no edge fix-ups needed: the
    # wrapper padding already carries the replicate values).
    buf_ref[:, 0:H] = xl_ref[...].astype(jnp.float32)
    buf_ref[:, H:H + TL] = xc_ref[...].astype(jnp.float32)
    buf_ref[:, H + TL:H + TL + H] = xr_ref[...].astype(jnp.float32)

    w = w_ref[...].astype(jnp.float32)                                   # (TR, K)
    acc = jnp.broadcast_to(b_ref[...].astype(jnp.float32), (TR, TL))
    # Static unroll over K taps: lane-shifted slices of the halo window (loads/XLU)
    # co-issue with the per-row multiply-accumulates (VALU).
    for k in range(K):
        start = H - pad + k                                              # shift = k - pad
        acc = acc + buf_ref[:, start:start + TL] * w[:, k:k + 1]
    o_ref[...] = acc.astype(o_ref.dtype)


def filter_forward(x, weight, bias, kernel_size, *, row_tile=256, seq_tile=1024):
    """Depthwise 1-D moving-average filter matching PyTorch `Filter`.

    x:      (B, L, C)
    weight: (C, 1, K)   nn.Conv1d depthwise weight
    bias:   (C,)
    returns (B, Lout, C), Lout = L + 2*(K//2) - K + 1.
    """
    B, L, C = x.shape
    K = int(kernel_size)
    pad = K // 2
    Lout = L + 2 * pad - K + 1                                           # handles even K too

    H = max(128, _round_up(pad, 128))                                    # halo width (lane-aligned)
    R = B * C
    TR = min(_round_up(int(row_tile), 8), _round_up(R, 8))               # sublane tile
    TL = _round_up(min(int(seq_tile), _round_up(Lout, 128)), H)          # lane tile (multiple of H)
    Rp = _round_up(R, TR)
    Lp = _round_up(Lout, TL)
    Wp = Lp + 2 * TL                                                     # TL left pad + data + right pad
    nR, nL = Rp // TR, Lp // TL
    bpt = TL // H                                                        # H-blocks per TL-block

    # Lane-dense relayout: rows = batch*channel on sublanes, sequence on lanes.
    # A single edge-mode pad provides (a) TL lanes of left replicate padding,
    # (b) >= pad lanes of right replicate padding, (c) row/lane alignment.
    x_rows = jnp.transpose(x, (0, 2, 1)).reshape(R, L)
    x_pad = jnp.pad(x_rows, ((0, Rp - R), (TL, Wp - TL - L)), mode="edge")

    # Per-row taps / bias: row r = b*C + c uses channel-c parameters.
    w_rows = jnp.pad(jnp.tile(weight[:, 0, :], (B, 1)), ((0, Rp - R), (0, 0)), mode="edge")
    b_rows = jnp.pad(jnp.tile(bias, B).reshape(-1, 1), ((0, Rp - R), (0, 0)), mode="edge")

    kernel = functools.partial(_filter_kernel, K=K, pad=pad, H=H, TL=TL)

    out_rows = pl.pallas_call(
        kernel,
        out_shape=jax.ShapeDtypeStruct((Rp, Lp), x.dtype),
        grid_spec=pltpu.PrefetchScalarGridSpec(
            num_scalar_prefetch=0,
            grid=(nR, nL),
            in_specs=[
                pl.BlockSpec((TR, TL), lambda i, j: (i, j + 1)),               # center
                pl.BlockSpec((TR, H), lambda i, j: (i, (j + 1) * bpt - 1)),    # left halo
                pl.BlockSpec((TR, H), lambda i, j: (i, (j + 2) * bpt)),        # right halo
                pl.BlockSpec((TR, K), lambda i, j: (i, 0)),                    # taps (row-only)
                pl.BlockSpec((TR, 1), lambda i, j: (i, 0)),                    # bias (row-only)
            ],
            out_specs=pl.BlockSpec((TR, TL), lambda i, j: (i, j)),
            scratch_shapes=[pltpu.VMEM((TR, TL + 2 * H), jnp.float32)],
        ),
        compiler_params=pltpu.CompilerParams(
            dimension_semantics=("parallel", "parallel"),
        ),
    )(x_pad, x_pad, x_pad, w_rows, b_rows)

    return out_rows[:R, :Lout].reshape(B, C, Lout).transpose(0, 2, 1)


def _reference(x, weight, bias, kernel_size):
    """Pure-JAX reference matching PyTorch Conv1d(groups=C, replicate pad)."""
    B, L, C = x.shape
    K = int(kernel_size)
    pad = K // 2
    Lout = L + 2 * pad - K + 1
    xpad = jnp.pad(x, ((0, 0), (pad, pad), (0, 0)), mode="edge")
    out = jnp.zeros((B, Lout, C), jnp.float32)
    for k in range(K):
        out = out + xpad[:, k:k + Lout, :].astype(jnp.float32) * weight[:, 0, k]
    return (out + bias).astype(x.dtype)


if __name__ == "__main__":
    key = jax.random.PRNGKey(0)
    k_bias, k_x, k_w2, k_b2 = jax.random.split(key, 4)

    # Config 1: module defaults (odd K=25), uniform 1/K taps, default tiles.
    channel, kernel_size = 4, 25
    B, L = 2, 16
    weight = (1.0 / kernel_size) * jnp.ones((channel, 1, kernel_size), jnp.float32)
    bound = 1.0 / float(kernel_size) ** 0.5
    bias = jax.random.uniform(k_bias, (channel,), jnp.float32, -bound, bound)
    x = jax.random.normal(k_x, (B, L, channel), jnp.float32)

    out = jax.block_until_ready(filter_forward(x, weight, bias, kernel_size))
    ref = _reference(x, weight, bias, kernel_size)
    assert out.shape == ref.shape == (B, L, channel)
    assert jnp.allclose(out, ref, atol=1e-5, rtol=1e-5)

    # Config 2: even K (PyTorch gives L+1 outputs), rows not a multiple of 8,
    # arbitrary (trained-like) taps, longer sequence with small tiles so the
    # multi-tile halo path (nL > 1) is exercised.
    channel2, K2, B2, L2 = 3, 6, 2, 300
    weight2 = 0.1 * jax.random.normal(k_w2, (channel2, 1, K2), jnp.float32)
    bias2 = 0.1 * jax.random.normal(k_b2, (channel2,), jnp.float32)
    x2 = jax.random.normal(jax.random.PRNGKey(1), (B2, L2, channel2), jnp.float32)

    out2 = jax.block_until_ready(
        filter_forward(x2, weight2, bias2, K2, row_tile=8, seq_tile=128))
    ref2 = _reference(x2, weight2, bias2, K2)
    assert out2.shape == ref2.shape == (B2, L2 + 1, channel2)
    assert jnp.allclose(out2, ref2, atol=1e-5, rtol=1e-5)

    print("KERNEL_OK")
</pallas_src>

<mosaic_0001>
module attributes {stable_mosaic.version = 11 : i64} {
  func.func @_filter_kernel(%arg0: i32, %arg1: i32, %arg2: memref<8x128xf32, #tpu.memory_space<vmem>>, %arg3: memref<8x128xf32, #tpu.memory_space<vmem>>, %arg4: memref<8x128xf32, #tpu.memory_space<vmem>>, %arg5: memref<8x25xf32, #tpu.memory_space<vmem>>, %arg6: memref<8x1xf32, #tpu.memory_space<vmem>>, %arg7: memref<8x128xf32, #tpu.memory_space<vmem>>, %arg8: memref<8x384xf32, #tpu.memory_space<vmem>>) attributes {dimension_semantics = [#tpu.dimension_semantics<parallel>, #tpu.dimension_semantics<parallel>], iteration_bounds = array<i64: 1, 1>, scalar_prefetch = 0 : i64, scratch_operands = 1 : i64, tpu.core_type = #tpu.core_type<tc>, window_params = [{transform_indices = @transform_0, window_bounds = array<i64: 8, 128>}, {transform_indices = @transform_1, window_bounds = array<i64: 8, 128>}, {transform_indices = @transform_2, window_bounds = array<i64: 8, 128>}, {transform_indices = @transform_3, window_bounds = array<i64: 8, 25>}, {transform_indices = @transform_4, window_bounds = array<i64: 8, 1>}, {transform_indices = @transform_5, window_bounds = array<i64: 8, 128>}]} {
    %c0 = arith.constant 0 : index
    %c0_0 = arith.constant 0 : index
    %0 = vector.load %arg3[%c0, %c0_0] : memref<8x128xf32, #tpu.memory_space<vmem>>, vector<8x128xf32>
    %c0_1 = arith.constant 0 : index
    %c0_2 = arith.constant 0 : index
    %1 = vector.load %arg8[%c0_1, %c0_2] : memref<8x384xf32, #tpu.memory_space<vmem>>, vector<8x128xf32>
    tpu.vector_store %arg8[%c0_1, %c0_2], %0 {strides = array<i32>} : memref<8x384xf32, #tpu.memory_space<vmem>>, vector<8x128xf32>,
    %c0_3 = arith.constant 0 : index
    %c0_4 = arith.constant 0 : index
    %2 = vector.load %arg2[%c0_3, %c0_4] : memref<8x128xf32, #tpu.memory_space<vmem>>, vector<8x128xf32>
    %c0_5 = arith.constant 0 : index
    %c128 = arith.constant 128 : index
    %3 = vector.load %arg8[%c0_5, %c128] : memref<8x384xf32, #tpu.memory_space<vmem>>, vector<8x128xf32>
    tpu.vector_store %arg8[%c0_5, %c128], %2 {strides = array<i32>} : memref<8x384xf32, #tpu.memory_space<vmem>>, vector<8x128xf32>,
    %c0_6 = arith.constant 0 : index
    %c0_7 = arith.constant 0 : index
    %4 = vector.load %arg4[%c0_6, %c0_7] : memref<8x128xf32, #tpu.memory_space<vmem>>, vector<8x128xf32>
    %c0_8 = arith.constant 0 : index
    %c256 = arith.constant 256 : index
    %5 = vector.load %arg8[%c0_8, %c256] : memref<8x384xf32, #tpu.memory_space<vmem>>, vector<8x128xf32>
    tpu.vector_store %arg8[%c0_8, %c256], %4 {strides = array<i32>} : memref<8x384xf32, #tpu.memory_space<vmem>>, vector<8x128xf32>,
    %c0_9 = arith.constant 0 : index
    %c0_10 = arith.constant 0 : index
    %6 = vector.load %arg5[%c0_9, %c0_10] : memref<8x25xf32, #tpu.memory_space<vmem>>, vector<8x25xf32>
    %c0_11 = arith.constant 0 : index
    %c0_12 = arith.constant 0 : index
    %7 = vector.load %arg6[%c0_11, %c0_12] : memref<8x1xf32, #tpu.memory_space<vmem>>, vector<8x1xf32>
    %8 = vector.shape_cast %7 : vector<8x1xf32> to vector<8x1xf32>
    %9 = vector.broadcast %8 : vector<8x1xf32> to vector<8x128xf32>
    %c0_13 = arith.constant 0 : index
    %c116 = arith.constant 116 : index
    %10 = vector.load %arg8[%c0_13, %c116] : memref<8x384xf32, #tpu.memory_space<vmem>>, vector<8x128xf32>
    %11 = vector.extract_strided_slice %6 {offsets = [0, 0], sizes = [8, 1], strides = [1, 1]} : vector<8x25xf32> to vector<8x1xf32>
    %12 = vector.broadcast %11 : vector<8x1xf32> to vector<8x128xf32>
    %13 = arith.mulf %10, %12 : vector<8x128xf32>
    %14 = arith.addf %9, %13 : vector<8x128xf32>
    %c0_14 = arith.constant 0 : index
    %c117 = arith.constant 117 : index
    %15 = vector.load %arg8[%c0_14, %c117] : memref<8x384xf32, #tpu.memory_space<vmem>>, vector<8x128xf32>
    %16 = vector.extract_strided_slice %6 {offsets = [0, 1], sizes = [8, 1], strides = [1, 1]} : vector<8x25xf32> to vector<8x1xf32>
    %17 = vector.broadcast %16 : vector<8x1xf32> to vector<8x128xf32>
    %18 = arith.mulf %15, %17 : vector<8x128xf32>
    %19 = arith.addf %14, %18 : vector<8x128xf32>
    %c0_15 = arith.constant 0 : index
    %c118 = arith.constant 118 : index
    %20 = vector.load %arg8[%c0_15, %c118] : memref<8x384xf32, #tpu.memory_space<vmem>>, vector<8x128xf32>
    %21 = vector.extract_strided_slice %6 {offsets = [0, 2], sizes = [8, 1], strides = [1, 1]} : vector<8x25xf32> to vector<8x1xf32>
    %22 = vector.broadcast %21 : vector<8x1xf32> to vector<8x128xf32>
    %23 = arith.mulf %20, %22 : vector<8x128xf32>
    %24 = arith.addf %19, %23 : vector<8x128xf32>
    %c0_16 = arith.constant 0 : index
    %c119 = arith.constant 119 : index
    %25 = vector.load %arg8[%c0_16, %c119] : memref<8x384xf32, #tpu.memory_space<vmem>>, vector<8x128xf32>
    %26 = vector.extract_strided_slice %6 {offsets = [0, 3], sizes = [8, 1], strides = [1, 1]} : vector<8x25xf32> to vector<8x1xf32>
    %27 = vector.broadcast %26 : vector<8x1xf32> to vector<8x128xf32>
    %28 = arith.mulf %25, %27 : vector<8x128xf32>
    %29 = arith.addf %24, %28 : vector<8x128xf32>
    %c0_17 = arith.constant 0 : index
    %c120 = arith.constant 120 : index
    %30 = vector.load %arg8[%c0_17, %c120] : memref<8x384xf32, #tpu.memory_space<vmem>>, vector<8x128xf32>
    %31 = vector.extract_strided_slice %6 {offsets = [0, 4], sizes = [8, 1], strides = [1, 1]} : vector<8x25xf32> to vector<8x1xf32>
    %32 = vector.broadcast %31 : vector<8x1xf32> to vector<8x128xf32>
    %33 = arith.mulf %30, %32 : vector<8x128xf32>
    %34 = arith.addf %29, %33 : vector<8x128xf32>
    %c0_18 = arith.constant 0 : index
    %c121 = arith.constant 121 : index
    %35 = vector.load %arg8[%c0_18, %c121] : memref<8x384xf32, #tpu.memory_space<vmem>>, vector<8x128xf32>
    %36 = vector.extract_strided_slice %6 {offsets = [0, 5], sizes = [8, 1], strides = [1, 1]} : vector<8x25xf32> to vector<8x1xf32>
    %37 = vector.broadcast %36 : vector<8x1xf32> to vector<8x128xf32>
    %38 = arith.mulf %35, %37 : vector<8x128xf32>
    %39 = arith.addf %34, %38 : vector<8x128xf32>
    %c0_19 = arith.constant 0 : index
    %c122 = arith.constant 122 : index
    %40 = vector.load %arg8[%c0_19, %c122] : memref<8x384xf32, #tpu.memory_space<vmem>>, vector<8x128xf32>
    %41 = vector.extract_strided_slice %6 {offsets = [0, 6], sizes = [8, 1], strides = [1, 1]} : vector<8x25xf32> to vector<8x1xf32>
    %42 = vector.broadcast %41 : vector<8x1xf32> to vector<8x128xf32>
    %43 = arith.mulf %40, %42 : vector<8x128xf32>
    %44 = arith.addf %39, %43 : vector<8x128xf32>
    %c0_20 = arith.constant 0 : index
    %c123 = arith.constant 123 : index
    %45 = vector.load %arg8[%c0_20, %c123] : memref<8x384xf32, #tpu.memory_space<vmem>>, vector<8x128xf32>
    %46 = vector.extract_strided_slice %6 {offsets = [0, 7], sizes = [8, 1], strides = [1, 1]} : vector<8x25xf32> to vector<8x1xf32>
    %47 = vector.broadcast %46 : vector<8x1xf32> to vector<8x128xf32>
    %48 = arith.mulf %45, %47 : vector<8x128xf32>
    %49 = arith.addf %44, %48 : vector<8x128xf32>
    %c0_21 = arith.constant 0 : index
    %c124 = arith.constant 124 : index
    %50 = vector.load %arg8[%c0_21, %c124] : memref<8x384xf32, #tpu.memory_space<vmem>>, vector<8x128xf32>
    %51 = vector.extract_strided_slice %6 {offsets = [0, 8], sizes = [8, 1], strides = [1, 1]} : vector<8x25xf32> to vector<8x1xf32>
    %52 = vector.broadcast %51 : vector<8x1xf32> to vector<8x128xf32>
    %53 = arith.mulf %50, %52 : vector<8x128xf32>
    %54 = arith.addf %49, %53 : vector<8x128xf32>
    %c0_22 = arith.constant 0 : index
    %c125 = arith.constant 125 : index
    %55 = vector.load %arg8[%c0_22, %c125] : memref<8x384xf32, #tpu.memory_space<vmem>>, vector<8x128xf32>
    %56 = vector.extract_strided_slice %6 {offsets = [0, 9], sizes = [8, 1], strides = [1, 1]} : vector<8x25xf32> to vector<8x1xf32>
    %57 = vector.broadcast %56 : vector<8x1xf32> to vector<8x128xf32>
    %58 = arith.mulf %55, %57 : vector<8x128xf32>
    %59 = arith.addf %54, %58 : vector<8x128xf32>
    %c0_23 = arith.constant 0 : index
    %c126 = arith.constant 126 : index
    %60 = vector.load %arg8[%c0_23, %c126] : memref<8x384xf32, #tpu.memory_space<vmem>>, vector<8x128xf32>
    %61 = vector.extract_strided_slice %6 {offsets = [0, 10], sizes = [8, 1], strides = [1, 1]} : vector<8x25xf32> to vector<8x1xf32>
    %62 = vector.broadcast %61 : vector<8x1xf32> to vector<8x128xf32>
    %63 = arith.mulf %60, %62 : vector<8x128xf32>
    %64 = arith.addf %59, %63 : vector<8x128xf32>
    %c0_24 = arith.constant 0 : index
    %c127 = arith.constant 127 : index
    %65 = vector.load %arg8[%c0_24, %c127] : memref<8x384xf32, #tpu.memory_space<vmem>>, vector<8x128xf32>
    %66 = vector.extract_strided_slice %6 {offsets = [0, 11], sizes = [8, 1], strides = [1, 1]} : vector<8x25xf32> to vector<8x1xf32>
    %67 = vector.broadcast %66 : vector<8x1xf32> to vector<8x128xf32>
    %68 = arith.mulf %65, %67 : vector<8x128xf32>
    %69 = arith.addf %64, %68 : vector<8x128xf32>
    %c0_25 = arith.constant 0 : index
    %c128_26 = arith.constant 128 : index
    %70 = vector.load %arg8[%c0_25, %c128_26] : memref<8x384xf32, #tpu.memory_space<vmem>>, vector<8x128xf32>
    %71 = vector.extract_strided_slice %6 {offsets = [0, 12], sizes = [8, 1], strides = [1, 1]} : vector<8x25xf32> to vector<8x1xf32>
    %72 = vector.broadcast %71 : vector<8x1xf32> to vector<8x128xf32>
    %73 = arith.mulf %70, %72 : vector<8x128xf32>
    %74 = arith.addf %69, %73 : vector<8x128xf32>
    %c0_27 = arith.constant 0 : index
    %c129 = arith.constant 129 : index
    %75 = vector.load %arg8[%c0_27, %c129] : memref<8x384xf32, #tpu.memory_space<vmem>>, vector<8x128xf32>
    %76 = vector.extract_strided_slice %6 {offsets = [0, 13], sizes = [8, 1], strides = [1, 1]} : vector<8x25xf32> to vector<8x1xf32>
    %77 = vector.broadcast %76 : vector<8x1xf32> to vector<8x128xf32>
    %78 = arith.mulf %75, %77 : vector<8x128xf32>
    %79 = arith.addf %74, %78 : vector<8x128xf32>
    %c0_28 = arith.constant 0 : index
    %c130 = arith.constant 130 : index
    %80 = vector.load %arg8[%c0_28, %c130] : memref<8x384xf32, #tpu.memory_space<vmem>>, vector<8x128xf32>
    %81 = vector.extract_strided_slice %6 {offsets = [0, 14], sizes = [8, 1], strides = [1, 1]} : vector<8x25xf32> to vector<8x1xf32>
    %82 = vector.broadcast %81 : vector<8x1xf32> to vector<8x128xf32>
    %83 = arith.mulf %80, %82 : vector<8x128xf32>
    %84 = arith.addf %79, %83 : vector<8x128xf32>
    %c0_29 = arith.constant 0 : index
    %c131 = arith.constant 131 : index
    %85 = vector.load %arg8[%c0_29, %c131] : memref<8x384xf32, #tpu.memory_space<vmem>>, vector<8x128xf32>
    %86 = vector.extract_strided_slice %6 {offsets = [0, 15], sizes = [8, 1], strides = [1, 1]} : vector<8x25xf32> to vector<8x1xf32>
    %87 = vector.broadcast %86 : vector<8x1xf32> to vector<8x128xf32>
    %88 = arith.mulf %85, %87 : vector<8x128xf32>
    %89 = arith.addf %84, %88 : vector<8x128xf32>
    %c0_30 = arith.constant 0 : index
    %c132 = arith.constant 132 : index
    %90 = vector.load %arg8[%c0_30, %c132] : memref<8x384xf32, #tpu.memory_space<vmem>>, vector<8x128xf32>
    %91 = vector.extract_strided_slice %6 {offsets = [0, 16], sizes = [8, 1], strides = [1, 1]} : vector<8x25xf32> to vector<8x1xf32>
    %92 = vector.broadcast %91 : vector<8x1xf32> to vector<8x128xf32>
    %93 = arith.mulf %90, %92 : vector<8x128xf32>
    %94 = arith.addf %89, %93 : vector<8x128xf32>
    %c0_31 = arith.constant 0 : index
    %c133 = arith.constant 133 : index
    %95 = vector.load %arg8[%c0_31, %c133] : memref<8x384xf32, #tpu.memory_space<vmem>>, vector<8x128xf32>
    %96 = vector.extract_strided_slice %6 {offsets = [0, 17], sizes = [8, 1], strides = [1, 1]} : vector<8x25xf32> to vector<8x1xf32>
    %97 = vector.broadcast %96 : vector<8x1xf32> to vector<8x128xf32>
    %98 = arith.mulf %95, %97 : vector<8x128xf32>
    %99 = arith.addf %94, %98 : vector<8x128xf32>
    %c0_32 = arith.constant 0 : index
    %c134 = arith.constant 134 : index
    %100 = vector.load %arg8[%c0_32, %c134] : memref<8x384xf32, #tpu.memory_space<vmem>>, vector<8x128xf32>
    %101 = vector.extract_strided_slice %6 {offsets = [0, 18], sizes = [8, 1], strides = [1, 1]} : vector<8x25xf32> to vector<8x1xf32>
    %102 = vector.broadcast %101 : vector<8x1xf32> to vector<8x128xf32>
    %103 = arith.mulf %100, %102 : vector<8x128xf32>
    %104 = arith.addf %99, %103 : vector<8x128xf32>
    %c0_33 = arith.constant 0 : index
    %c135 = arith.constant 135 : index
    %105 = vector.load %arg8[%c0_33, %c135] : memref<8x384xf32, #tpu.memory_space<vmem>>, vector<8x128xf32>
    %106 = vector.extract_strided_slice %6 {offsets = [0, 19], sizes = [8, 1], strides = [1, 1]} : vector<8x25xf32> to vector<8x1xf32>
    %107 = vector.broadcast %106 : vector<8x1xf32> to vector<8x128xf32>
    %108 = arith.mulf %105, %107 : vector<8x128xf32>
    %109 = arith.addf %104, %108 : vector<8x128xf32>
    %c0_34 = arith.constant 0 : index
    %c136 = arith.constant 136 : index
    %110 = vector.load %arg8[%c0_34, %c136] : memref<8x384xf32, #tpu.memory_space<vmem>>, vector<8x128xf32>
    %111 = vector.extract_strided_slice %6 {offsets = [0, 20], sizes = [8, 1], strides = [1, 1]} : vector<8x25xf32> to vector<8x1xf32>
    %112 = vector.broadcast %111 : vector<8x1xf32> to vector<8x128xf32>
    %113 = arith.mulf %110, %112 : vector<8x128xf32>
    %114 = arith.addf %109, %113 : vector<8x128xf32>
    %c0_35 = arith.constant 0 : index
    %c137 = arith.constant 137 : index
    %115 = vector.load %arg8[%c0_35, %c137] : memref<8x384xf32, #tpu.memory_space<vmem>>, vector<8x128xf32>
    %116 = vector.extract_strided_slice %6 {offsets = [0, 21], sizes = [8, 1], strides = [1, 1]} : vector<8x25xf32> to vector<8x1xf32>
    %117 = vector.broadcast %116 : vector<8x1xf32> to vector<8x128xf32>
    %118 = arith.mulf %115, %117 : vector<8x128xf32>
    %119 = arith.addf %114, %118 : vector<8x128xf32>
    %c0_36 = arith.constant 0 : index
    %c138 = arith.constant 138 : index
    %120 = vector.load %arg8[%c0_36, %c138] : memref<8x384xf32, #tpu.memory_space<vmem>>, vector<8x128xf32>
    %121 = vector.extract_strided_slice %6 {offsets = [0, 22], sizes = [8, 1], strides = [1, 1]} : vector<8x25xf32> to vector<8x1xf32>
    %122 = vector.broadcast %121 : vector<8x1xf32> to vector<8x128xf32>
    %123 = arith.mulf %120, %122 : vector<8x128xf32>
    %124 = arith.addf %119, %123 : vector<8x128xf32>
    %c0_37 = arith.constant 0 : index
    %c139 = arith.constant 139 : index
    %125 = vector.load %arg8[%c0_37, %c139] : memref<8x384xf32, #tpu.memory_space<vmem>>, vector<8x128xf32>
    %126 = vector.extract_strided_slice %6 {offsets = [0, 23], sizes = [8, 1], strides = [1, 1]} : vector<8x25xf32> to vector<8x1xf32>
    %127 = vector.broadcast %126 : vector<8x1xf32> to vector<8x128xf32>
    %128 = arith.mulf %125, %127 : vector<8x128xf32>
    %129 = arith.addf %124, %128 : vector<8x128xf32>
    %c0_38 = arith.constant 0 : index
    %c140 = arith.constant 140 : index
    %130 = vector.load %arg8[%c0_38, %c140] : memref<8x384xf32, #tpu.memory_space<vmem>>, vector<8x128xf32>
    %131 = vector.extract_strided_slice %6 {offsets = [0, 24], sizes = [8, 1], strides = [1, 1]} : vector<8x25xf32> to vector<8x1xf32>
    %132 = vector.broadcast %131 : vector<8x1xf32> to vector<8x128xf32>
    %133 = arith.mulf %130, %132 : vector<8x128xf32>
    %134 = arith.addf %129, %133 : vector<8x128xf32>
    %c0_39 = arith.constant 0 : index
    %c0_40 = arith.constant 0 : index
    %135 = vector.load %arg7[%c0_39, %c0_40] : memref<8x128xf32, #tpu.memory_space<vmem>>, vector<8x128xf32>
    tpu.vector_store %arg7[%c0_39, %c0_40], %134 {strides = array<i32>} : memref<8x128xf32, #tpu.memory_space<vmem>>, vector<8x128xf32>,
    return
  }
  func.func @transform_0(%arg0: i32, %arg1: i32) -> (i32, i32) {
    %c1_i32 = arith.constant 1 : i32
    %0 = arith.addi %arg1, %c1_i32 : i32
    %c0_i32 = arith.constant 0 : i32
    return %arg0, %0 : i32, i32
  }
  func.func @transform_1(%arg0: i32, %arg1: i32) -> (i32, i32) {
    %c1_i32 = arith.constant 1 : i32
    %0 = arith.addi %arg1, %c1_i32 : i32
    %c1_i32_0 = arith.constant 1 : i32
    %1 = arith.muli %0, %c1_i32_0 : i32
    %c1_i32_1 = arith.constant 1 : i32
    %2 = arith.subi %1, %c1_i32_1 : i32
    %c0_i32 = arith.constant 0 : i32
    return %arg0, %2 : i32, i32
  }
  func.func @transform_2(%arg0: i32, %arg1: i32) -> (i32, i32) {
    %c2_i32 = arith.constant 2 : i32
    %0 = arith.addi %arg1, %c2_i32 : i32
    %c1_i32 = arith.constant 1 : i32
    %1 = arith.muli %0, %c1_i32 : i32
    %c0_i32 = arith.constant 0 : i32
    return %arg0, %1 : i32, i32
  }
  func.func @transform_3(%arg0: i32, %arg1: i32) -> (i32, i32) {
    %c0_i32 = arith.constant 0 : i32
    %c0_i32_0 = arith.constant 0 : i32
    return %arg0, %c0_i32 : i32, i32
  }
  func.func @transform_4(%arg0: i32, %arg1: i32) -> (i32, i32) {
    %c0_i32 = arith.constant 0 : i32
    %c0_i32_0 = arith.constant 0 : i32
    return %arg0, %c0_i32 : i32, i32
  }
  func.func @transform_5(%arg0: i32, %arg1: i32) -> (i32, i32) {
    %c0_i32 = arith.constant 0 : i32
    return %arg0, %arg1 : i32, i32
  }
}

</mosaic_0001>

<bundles_post_ra>
// kernel: tpu_custom_call.1
= control target key start
LH: loop header
LB: loop body
LE: loop exit
PB: predicated region body
PF: predicated region fallthrough
CT: control target
= control target key end

     0   :  { %10 = vsyncpa [#allocation4], 0  ;;  %s902_s0 = inlined_call_operand.hbm [shape: f32[8,384], index: 0, kind: input, shape index: {}]   ;;  %s903_s1 = inlined_call_operand.hbm [shape: f32[8,384], index: 1, kind: input, shape index: {}]   ;;  %s904_s2 = inlined_call_operand.hbm [shape: f32[8,384], index: 2, kind: input, shape index: {}]   ;;  %s905_s3 = inlined_call_operand.vmem [shape: f32[8,25], index: 3, kind: input, shape index: {}]   ;;  %s906_s4 = inlined_call_operand.vmem [shape: f32[8,1], index: 4, kind: input, shape index: {}]   ;;  %s907_s5 = inlined_call_operand.hbm [shape: f32[8,128], index: 5, kind: output, shape index: {}]  }
   0x1   :  { %11 = vsyncpa [#allocation7], 0 }
   0x2   :  { %12 = vsyncpa [#allocation5], 0  ;;  %s541_s20 = scalar_lea.hbm %s902_s0, 128  ;;  %s714_s21 = smov [#allocation6]  }
   0x3   :  { %s32_s22 = sshll.u32 %s714_s21, 4  ;;  %s715_s23 = smov [#allocation3]   ;;  %s33_s22 = int_to_ptr.vmem [resolvable:$true] %s32_s22 }
   0x4   :  { %s22_s24 = sshll.u32 %s715_s23, 4  ;;  %s630_s25 = scalar_lea.vmem %s33_s22, 128  ;;  %s23_s24 = int_to_ptr.vmem [resolvable:$true] %s22_s24 }
   0x5   :  { %p631_p0 = scmp.ne.s32.totalorder %s33_s22, %s630_s25  ;;  %p635_p1 = scmp.lt.s32.totalorder %s33_s22, %s33_s22 }
   0x6   :  { %p636_p2 = scmp.lt.s32.totalorder %s630_s25, %s630_s25 }
   0x8   :  { %p637_p3 = por %p636_p2, %p635_p1 }
   0xa   :  { %p638_p4 = pnand %p637_p3, %p631_p0 }
   0xc   :  { %641 = shalt.err (!%p638_p4)
}
   0xd   :  { %35 = dma.hbm_to_vmem [thread:$0]  %s903_s1, 128, %s33_s22, [#allocation7]  }
   0xe   :  { %s652_s28 = scalar_lea.vmem %s23_s24, 128  ;;  %p657_p6 = scmp.lt.s32.totalorder %s23_s24, %s23_s24 }
   0xf   :  { %p653_p5 = scmp.ne.s32.totalorder %s23_s24, %s652_s28  ;;  %p658_p7 = scmp.lt.s32.totalorder %s652_s28, %s652_s28 }
  0x11   :  { %p659_p8 = por %p658_p7, %p657_p6 }
  0x13   :  { %p660_p9 = pnand %p659_p8, %p653_p5 }
  0x15   :  { %663 = shalt.err (!%p660_p9)
}
  0x16   :  { %25 = dma.hbm_to_vmem [thread:$0]  %s541_s20, 128, %s23_s24, [#allocation4]  }
  0x17   :  { %s542_s30 = scalar_lea.hbm %s904_s2, 256  ;;  %s716_s6 = smov [#allocation8]  }
  0x18   :  { %s45_s7 = sshll.u32 %s716_s6, 4  ;;  %s46_s7 = int_to_ptr.vmem [resolvable:$true] %s45_s7 }
  0x19   :  { %s675_s8 = scalar_lea.vmem %s46_s7, 128  ;;  %p680_p11 = scmp.lt.s32.totalorder %s46_s7, %s46_s7 }
  0x1a   :  { %p676_p10 = scmp.ne.s32.totalorder %s46_s7, %s675_s8  ;;  %p681_p12 = scmp.lt.s32.totalorder %s675_s8, %s675_s8 }
  0x1c   :  { %p682_p13 = por %p681_p12, %p680_p11 }
  0x1e   :  { %p683_p0 = pnand %p682_p13, %p676_p10 }
  0x20   :  { %686 = shalt.err (!%p683_p0)
}
  0x21   :  { %48 = dma.hbm_to_vmem [thread:$0]  %s542_s30, 128, %s46_s7, [#allocation7]  }
  0x22   :  { %708 = dma.done.wait [#allocation4], 128  }
  0x23   :  { %709 = vsyncadd [#allocation4], 4294967168 }
  0x24   :  { %710 = dma.done.wait [#allocation7], 256  }
  0x25   :  { %711 = vsyncadd [#allocation7], 4294967040  ;;  %v717_v0 = vmov 1   ;;  %v718_v1 = vmov 3   ;;  %v810_v2 = vld [vmem:[%s905_s3] sm:$0xff]  ;;  %v719_v3 = vmov 2  }
  0x26   :  { %597 = vset.pattern.permute.xlu0 %v717_v0  ;;  %599 = vset.pattern.permute.xlu1 %v718_v1  ;;  %v720_v4 = vmov 4   ;;  %v721_v5 = vmov 5   ;;  %v722_v6 = vmov 6   ;;  %v723_v7 = vmov 7   ;;  %v71_v26 = vld [vmem:[%s906_s4] sm:$0xff]  ;;  %v842_v28 = vld [vmem:[#allocation6] sm:$0xff] }
  0x27   :  { %89 = vperm.xlu0 %597, %v810_v2   ;;  %125 = vperm.xlu1 %599, %v810_v2   ;;  %v724_v8 = vmov 9   ;;  %v725_v9 = vmov 8   ;;  %v726_v10 = vmov 12   ;;  %v727_v11 = vmov 10   ;;  %v840_v27 = vld [vmem:[#allocation3] sm:$0xff]  ;;  %s742_s10 = smov 127  }
  0x28   :  { %v728_v12 = vmov 15   ;;  %v729_v13 = vmov 11   ;;  %v730_v14 = vmov 18   ;;  %v731_v15 = vmov 13   ;;  %s743_s4 = smov 126   ;;  %s744_s11 = smov 125  }
  0x29   :  { %v732_v16 = vmov 21   ;;  %v733_v17 = vmov 14   ;;  %v734_v18 = vmov 24   ;;  %v735_v19 = vmov 16   ;;  %s745_s12 = smov 124   ;;  %s746_s13 = smov 123  }
  0x2a   :  { %v736_v20 = vmov 17   ;;  %v737_v21 = vmov 19   ;;  %v738_v22 = vmov 20   ;;  %v739_v23 = vmov 22   ;;  %s747_s14 = smov 122   ;;  %s748_s15 = smov 121  }
  0x2b   :  { %598 = vset.pattern.permute.xlu0 %v719_v3  ;;  %600 = vset.pattern.permute.xlu1 %v720_v4  ;;  %v740_v24 = vmov 23   ;;  %v741_v25 = vmov 0   ;;  %s749_s16 = smov 120   ;;  %s750_s17 = smov 119   ;;  %vm100_vm0 = vcmask 1039360   ;;  %vm118_vm1 = vcmask 1031168  }
  0x2c   :  { %107 = vperm.xlu0 %598, %v810_v2   ;;  %143 = vperm.xlu1 %600, %v810_v2   ;;  %s751_s18 = smov 118   ;;  %s752_s19 = smov 117   ;;  %vm136_vm2 = vcmask 1022976   ;;  %vm154_vm3 = vcmask 1014784   ;;  %vm172_vm4 = vcmask 1006592   ;;  %vm190_vm5 = vcmask 998400  }
  0x2d   :  { %s753_s20 = smov 115   ;;  %s754_s21 = smov 116   ;;  %vm208_vm6 = vcmask 990208   ;;  %vm226_vm7 = vcmask 982016   ;;  %vm244_vm8 = vcmask 973824   ;;  %vm262_vm9 = vcmask 965632  }
  0x2e   :  { %s755_s22 = smov 114   ;;  %s756_s23 = smov 113   ;;  %vm280_vm10 = vcmask 957440   ;;  %vm311_vm11 = vcmask 941056   ;;  %vm329_vm12 = vcmask 932864   ;;  %vm347_vm13 = vcmask 924672  }
  0x2f   :  { %s757_s24 = smov 112   ;;  %s758_s25 = smov 111   ;;  %vm365_vm14 = vcmask 916480   ;;  %vm383_vm15 = vcmask 908288  }
  0x30   :  { %601 = vset.pattern.permute.xlu1 %v721_v5  ;;  %602 = vset.pattern.permute.xlu0 %v722_v6  ;;  %s759_s26 = smov 110   ;;  %s760_s27 = smov 109  }
  0x31   :  { %161 = vperm.xlu1 %601, %v810_v2   ;;  %179 = vperm.xlu0 %602, %v810_v2   ;;  %s761_s28 = smov 108   ;;  %s762_s0 = smov 107  }
  0x32   :  { %s763_s29 = smov 106   ;;  %s764_s30 = smov 105  }
  0x33   :  { %s765_s6 = smov 104   ;;  %s766_s7 = smov 12  }
  0x34   :  { %s767_s8 = smov [#allocation9]  }
  0x35   :  { %603 = vset.pattern.permute.xlu1 %v723_v7  ;;  %605 = vset.pattern.permute.xlu0 %v724_v8  ;;  %s531_s1 = sshll.u32 %s767_s8, 4  ;;  %s532_s1 = int_to_ptr.vmem [resolvable:$true] %s531_s1 }
  0x36   :  { %197 = vperm.xlu1 %603, %v810_v2   ;;  %233 = vperm.xlu0 %605, %v810_v2   ;;  %s688_s2 = scalar_lea.vmem %s532_s1, 128  ;;  %p693_p2 = scmp.lt.s32.totalorder %s532_s1, %s532_s1 }
  0x37   :  { %p689_p1 = scmp.ne.s32.totalorder %s532_s1, %s688_s2  ;;  %p694_p3 = scmp.lt.s32.totalorder %s688_s2, %s688_s2 }
  0x39   :  { %p695_p4 = por %p694_p3, %p693_p2 }
  0x3a   :  { %604 = vset.pattern.permute.xlu1 %v725_v9  ;;  %608 = vset.pattern.permute.xlu0 %v726_v10 }
  0x3b   :  { %215 = vperm.xlu1 %604, %v810_v2   ;;  %287 = vperm.xlu0 %608, %v810_v2   ;;  %p696_p5 = pnand %p695_p4, %p689_p1 }
  0x3f   :  { %606 = vset.pattern.permute.xlu1 %v727_v11  ;;  %611 = vset.pattern.permute.xlu0 %v728_v12 }
  0x40   :  { %251 = vperm.xlu1 %606, %v810_v2   ;;  %336 = vperm.xlu0 %611, %v810_v2  }
  0x44   :  { %607 = vset.pattern.permute.xlu1 %v729_v13  ;;  %614 = vset.pattern.permute.xlu0 %v730_v14 }
  0x45   :  { %269 = vperm.xlu1 %607, %v810_v2   ;;  %390 = vperm.xlu0 %614, %v810_v2  }
  0x49   :  { %609 = vset.pattern.permute.xlu1 %v731_v15  ;;  %617 = vset.pattern.permute.xlu0 %v732_v16 }
  0x4a   :  { %300 = vperm.xlu1 %609, %v810_v2   ;;  %444 = vperm.xlu0 %617, %v810_v2  }
  0x4e   :  { %610 = vset.pattern.permute.xlu1 %v733_v17  ;;  %620 = vset.pattern.permute.xlu0 %v734_v18 }
  0x4f   :  { %318 = vperm.xlu1 %610, %v810_v2   ;;  %498 = vperm.xlu0 %620, %v810_v2  }
  0x53   :  { %612 = vset.pattern.permute.xlu1 %v735_v19 }
  0x54   :  { %354 = vperm.xlu1 %612, %v810_v2  }
  0x58   :  { %613 = vset.pattern.permute.xlu1 %v736_v20 }
  0x59   :  { %372 = vperm.xlu1 %613, %v810_v2  }
  0x5d   :  { %615 = vset.pattern.permute.xlu1 %v737_v21 }
  0x5e   :  { %408 = vperm.xlu1 %615, %v810_v2  }
  0x62   :  { %616 = vset.pattern.permute.xlu1 %v738_v22 }
  0x63   :  { %426 = vperm.xlu1 %616, %v810_v2  }
  0x67   :  { %618 = vset.pattern.permute.xlu1 %v739_v23 }
  0x68   :  { %462 = vperm.xlu1 %618, %v810_v2  }
  0x6c   :  { %619 = vset.pattern.permute.xlu1 %v740_v24 }
  0x6d   :  { %480 = vperm.xlu1 %619, %v810_v2  }
  0x71   :  { %621 = vset.pattern.permute.xlu1 %v741_v25 }
  0x72   :  { %81 = vperm.xlu1 %621, %v810_v2   ;;  %v868_v2 = vld [vmem:[#allocation8] sm:$0xff] }
  0x76   :  { %74 = vperm.xlu1 %621, %v71_v26  }
  0xa2   :  { %v90_v29 = vpop.permute.xlu0 %89  ;;  %v126_v32 = vpop.permute.xlu1 %125 }
  0xa3   :  { %v92_v30 = vmul.f32 %v90_v29, %v842_v28  ;;  %v93_v31 = vmul.f32 %v90_v29, %v840_v27  ;;  %v128_v37 = vmul.f32 %v126_v32, %v842_v28  ;;  %v129_v38 = vmul.f32 %v126_v32, %v840_v27 }
  0xa5   :  { %98 = vrot.lane.b32.xlu1 %v93_v31, %s742_s10  ;;  %96 = vrot.lane.b32.xlu0 %v92_v30, %s742_s10 }
  0xa7   :  { %v108_v33 = vpop.permute.xlu0 %107  ;;  %v144_v36 = vpop.permute.xlu1 %143 }
  0xa8   :  { %v110_v34 = vmul.f32 %v108_v33, %v842_v28  ;;  %v111_v35 = vmul.f32 %v108_v33, %v840_v27  ;;  %v146_v39 = vmul.f32 %v144_v36, %v842_v28  ;;  %v147_v40 = vmul.f32 %v144_v36, %v840_v27 }
  0xaa   :  { %116 = vrot.lane.b32.xlu1 %v111_v35, %s743_s4  ;;  %114 = vrot.lane.b32.xlu0 %v110_v34, %s743_s4 }
  0xac   :  { %v162_v41 = vpop.permute.xlu1 %161  ;;  %v180_v44 = vpop.permute.xlu0 %179 }
  0xad   :  { %v164_v42 = vmul.f32 %v162_v41, %v842_v28  ;;  %v165_v43 = vmul.f32 %v162_v41, %v840_v27  ;;  %v182_v46 = vmul.f32 %v180_v44, %v842_v28  ;;  %v183_v47 = vmul.f32 %v180_v44, %v840_v27 }
  0xae   :  { %134 = vrot.lane.b32.xlu1 %v129_v38, %s744_s11  ;;  %132 = vrot.lane.b32.xlu0 %v128_v37, %s744_s11 }
  0xb1   :  { %v198_v45 = vpop.permute.xlu1 %197  ;;  %v234_v54 = vpop.permute.xlu0 %233 }
  0xb2   :  { %152 = vrot.lane.b32.xlu1 %v147_v40, %s745_s12  ;;  %150 = vrot.lane.b32.xlu0 %v146_v39, %s745_s12  ;;  %v200_v49 = vmul.f32 %v198_v45, %v842_v28  ;;  %v201_v50 = vmul.f32 %v198_v45, %v840_v27  ;;  %v236_v55 = vmul.f32 %v234_v54, %v842_v28 }
  0xb3   :  { %v237_v56 = vmul.f32 %v234_v54, %v840_v27 }
  0xb6   :  { %170 = vrot.lane.b32.xlu1 %v165_v43, %s746_s13  ;;  %168 = vrot.lane.b32.xlu0 %v164_v42, %s746_s13  ;;  %v216_v48 = vpop.permute.xlu1 %215  ;;  %v288_v63 = vpop.permute.xlu0 %287 }
  0xb7   :  { %v218_v52 = vmul.f32 %v216_v48, %v842_v28  ;;  %v219_v53 = vmul.f32 %v216_v48, %v840_v27  ;;  %v290_v1 = vmul.f32 %v288_v63, %v840_v27 }
  0xba   :  { %188 = vrot.lane.b32.xlu1 %v183_v47, %s747_s14  ;;  %186 = vrot.lane.b32.xlu0 %v182_v46, %s747_s14 }
  0xbb   :  { %v252_v51 = vpop.permute.xlu1 %251  ;;  %v337_v6 = vpop.permute.xlu0 %336 }
  0xbc   :  { %v254_v58 = vmul.f32 %v252_v51, %v842_v28  ;;  %v255_v59 = vmul.f32 %v252_v51, %v840_v27  ;;  %v339_v9 = vmul.f32 %v337_v6, %v840_v27  ;;  %v340_v10 = vmul.f32 %v337_v6, %v868_v2 }
  0xbe   :  { %206 = vrot.lane.b32.xlu1 %v201_v50, %s748_s15  ;;  %204 = vrot.lane.b32.xlu0 %v200_v49, %s748_s15 }
  0xc0   :  { %v270_v57 = vpop.permute.xlu1 %269  ;;  %v391_v15 = vpop.permute.xlu0 %390 }
  0xc1   :  { %v272_v61 = vmul.f32 %v270_v57, %v842_v28  ;;  %v273_v62 = vmul.f32 %v270_v57, %v840_v27  ;;  %v393_v18 = vmul.f32 %v391_v15, %v840_v27  ;;  %v394_v19 = vmul.f32 %v391_v15, %v868_v2 }
  0xc2   :  { %224 = vrot.lane.b32.xlu1 %v219_v53, %s749_s16  ;;  %222 = vrot.lane.b32.xlu0 %v218_v52, %s749_s16 }
  0xc5   :  { %v301_v60 = vpop.permute.xlu1 %300  ;;  %v445_v24 = vpop.permute.xlu0 %444 }
  0xc6   :  { %242 = vrot.lane.b32.xlu1 %v237_v56, %s750_s17  ;;  %240 = vrot.lane.b32.xlu0 %v236_v55, %s750_s17  ;;  %v303_v0 = vmul.f32 %v301_v60, %v840_v27  ;;  %v304_v4 = vmul.f32 %v301_v60, %v868_v2  ;;  %v447_v29 = vmul.f32 %v445_v24, %v840_v27 }
  0xc7   :  { %v448_v30 = vmul.f32 %v445_v24, %v868_v2 }
  0xca   :  { %260 = vrot.lane.b32.xlu1 %v255_v59, %s751_s18  ;;  %258 = vrot.lane.b32.xlu0 %v254_v58, %s751_s18  ;;  %v319_v3 = vpop.permute.xlu1 %318  ;;  %v499_v35 = vpop.permute.xlu0 %498 }
  0xcb   :  { %v321_v5 = vmul.f32 %v319_v3, %v840_v27  ;;  %v322_v8 = vmul.f32 %v319_v3, %v868_v2  ;;  %v501_v37 = vmul.f32 %v499_v35, %v840_v27  ;;  %v502_v38 = vmul.f32 %v499_v35, %v868_v2 }
  0xce   :  { %278 = vrot.lane.b32.xlu1 %v273_v62, %s752_s19  ;;  %276 = vrot.lane.b32.xlu0 %v272_v61, %s752_s19 }
  0xcf   :  { %v355_v7 = vpop.permute.xlu1 %354 }
  0xd0   :  { %v357_v11 = vmul.f32 %v355_v7, %v840_v27  ;;  %v358_v13 = vmul.f32 %v355_v7, %v868_v2 }
  0xd2   :  { %307 = vrot.lane.b32.xlu1 %v303_v0, %s753_s20  ;;  %292 = vrot.lane.b32.xlu0 %v290_v1, %s754_s21 }
  0xd4   :  { %v373_v12 = vpop.permute.xlu1 %372 }
  0xd5   :  { %v375_v14 = vmul.f32 %v373_v12, %v840_v27  ;;  %v376_v17 = vmul.f32 %v373_v12, %v868_v2 }
  0xd6   :  { %325 = vrot.lane.b32.xlu1 %v321_v5, %s755_s22  ;;  %309 = vrot.lane.b32.xlu0 %v304_v4, %s753_s20 }
  0xd9   :  { %v409_v16 = vpop.permute.xlu1 %408 }
  0xda   :  { %343 = vrot.lane.b32.xlu1 %v339_v9, %s756_s23  ;;  %327 = vrot.lane.b32.xlu0 %v322_v8, %s755_s22  ;;  %v411_v20 = vmul.f32 %v409_v16, %v840_v27  ;;  %v412_v22 = vmul.f32 %v409_v16, %v868_v2 }
  0xde   :  { %361 = vrot.lane.b32.xlu1 %v357_v11, %s757_s24  ;;  %345 = vrot.lane.b32.xlu0 %v340_v10, %s756_s23  ;;  %v427_v21 = vpop.permute.xlu1 %426 }
  0xdf   :  { %v429_v23 = vmul.f32 %v427_v21, %v840_v27  ;;  %v430_v26 = vmul.f32 %v427_v21, %v868_v2 }
  0xe2   :  { %379 = vrot.lane.b32.xlu1 %v375_v14, %s758_s25  ;;  %363 = vrot.lane.b32.xlu0 %v358_v13, %s757_s24 }
  0xe3   :  { %v463_v25 = vpop.permute.xlu1 %462 }
  0xe4   :  { %v465_v31 = vmul.f32 %v463_v25, %v840_v27  ;;  %v466_v33 = vmul.f32 %v463_v25, %v868_v2 }
  0xe6   :  { %397 = vrot.lane.b32.xlu1 %v393_v18, %s759_s26  ;;  %381 = vrot.lane.b32.xlu0 %v376_v17, %s758_s25 }
  0xe8   :  { %v481_v32 = vpop.permute.xlu1 %480 }
  0xe9   :  { %v483_v34 = vmul.f32 %v481_v32, %v840_v27  ;;  %v484_v36 = vmul.f32 %v481_v32, %v868_v2 }
  0xea   :  { %415 = vrot.lane.b32.xlu1 %v411_v20, %s760_s27  ;;  %399 = vrot.lane.b32.xlu0 %v394_v19, %s759_s26 }
  0xed   :  { %v82_v39 = vpop.permute.xlu1 %81 }
  0xee   :  { %433 = vrot.lane.b32.xlu1 %v429_v23, %s761_s28  ;;  %417 = vrot.lane.b32.xlu0 %v412_v22, %s760_s27  ;;  %v84_v57 = vmul.f32 %v82_v39, %v842_v28  ;;  %v85_v4 = vmul.f32 %v82_v39, %v840_v27 }
  0xf1   :  { %v75_v40 = vpop.permute.xlu1 %74 }
  0xf2   :  { %451 = vrot.lane.b32.xlu1 %v447_v29, %s762_s0  ;;  %435 = vrot.lane.b32.xlu0 %v430_v26, %s761_s28  ;;  %v86_v61 = vadd.f32 %v84_v57, %v75_v40  ;;  %v87_v10 = vadd.f32 %v85_v4, %v75_v40 }
  0xf6   :  { %469 = vrot.lane.b32.xlu1 %v465_v31, %s763_s29  ;;  %453 = vrot.lane.b32.xlu0 %v448_v30, %s762_s0 }
  0xfa   :  { %487 = vrot.lane.b32.xlu1 %v483_v34, %s764_s30  ;;  %471 = vrot.lane.b32.xlu0 %v466_v33, %s763_s29 }
  0xfe   :  { %505 = vrot.lane.b32.xlu1 %v501_v37, %s765_s6  ;;  %489 = vrot.lane.b32.xlu0 %v484_v36, %s764_s30 }
 0x102   :  { %507 = vrot.lane.b32.xlu0 %v502_v38, %s765_s6 }
 0x117   :  { %v99_v41 = vpop.permute.xlu1 %98  ;;  %v97_v42 = vpop.permute.xlu0 %96 }
 0x118   :  { %v101_v60 = vsel %vm100_vm0, %v97_v42, %v99_v41  ;;  %v105_v17 = vadd.f32 %v99_v41, %v87_v10  ;;  %vm401_vm0 = vcmask 900096  }
 0x119   :  { %v104_v1 = vadd.f32 %v101_v60, %v86_v61 }
 0x11c   :  { %v117_v43 = vpop.permute.xlu1 %116  ;;  %v115_v44 = vpop.permute.xlu0 %114 }
 0x11d   :  { %v119_v62 = vsel %vm118_vm1, %v115_v44, %v117_v43  ;;  %v123_v21 = vadd.f32 %v117_v43, %v105_v17  ;;  %vm419_vm1 = vcmask 891904  }
 0x11e   :  { %v122_v3 = vadd.f32 %v119_v62, %v104_v1 }
 0x120   :  { %v135_v45 = vpop.permute.xlu1 %134  ;;  %v133_v46 = vpop.permute.xlu0 %132 }
 0x121   :  { %v137_v2 = vsel %vm136_vm2, %v133_v46, %v135_v45  ;;  %v141_v24 = vadd.f32 %v135_v45, %v123_v21  ;;  %vm437_vm2 = vcmask 883712  }
 0x122   :  { %v140_v7 = vadd.f32 %v137_v2, %v122_v3 }
 0x124   :  { %v153_v47 = vpop.permute.xlu1 %152  ;;  %v151_v48 = vpop.permute.xlu0 %150 }
 0x125   :  { %v155_v5 = vsel %vm154_vm3, %v151_v48, %v153_v47  ;;  %v159_v31 = vadd.f32 %v153_v47, %v141_v24  ;;  %vm455_vm3 = vcmask 875520  }
 0x126   :  { %v158_v9 = vadd.f32 %v155_v5, %v140_v7 }
 0x128   :  { %v171_v49 = vpop.permute.xlu1 %170  ;;  %v169_v50 = vpop.permute.xlu0 %168 }
 0x129   :  { %v173_v8 = vsel %vm172_vm4, %v169_v50, %v171_v49  ;;  %v177_v34 = vadd.f32 %v171_v49, %v159_v31  ;;  %vm473_vm4 = vcmask 867328  }
 0x12a   :  { %v176_v14 = vadd.f32 %v173_v8, %v158_v9 }
 0x12c   :  { %v189_v51 = vpop.permute.xlu1 %188  ;;  %v187_v52 = vpop.permute.xlu0 %186 }
 0x12d   :  { %v191_v11 = vsel %vm190_vm5, %v187_v52, %v189_v51  ;;  %v195_v38 = vadd.f32 %v189_v51, %v177_v34  ;;  %vm491_vm5 = vcmask 859136  }
 0x12e   :  { %v194_v16 = vadd.f32 %v191_v11, %v176_v14 }
 0x130   :  { %v207_v53 = vpop.permute.xlu1 %206  ;;  %v205_v54 = vpop.permute.xlu0 %204 }
 0x131   :  { %v209_v15 = vsel %vm208_vm6, %v205_v54, %v207_v53  ;;  %v213_v39 = vadd.f32 %v207_v53, %v195_v38  ;;  %vm509_vm6 = vcmask 850944  }
 0x132   :  { %v212_v20 = vadd.f32 %v209_v15, %v194_v16 }
 0x134   :  { %v893_v55 = vpop.permute.xlu1 %224  ;;  %v223_v56 = vpop.permute.xlu0 %222 }
 0x135   :  { %v227_v27 = vsel %vm226_vm7, %v223_v56, %v893_v55  ;;  %v231_v43 = vadd.f32 %v893_v55, %v213_v39  ;;  %vm521_vm7 = vcmask 97280  }
 0x136   :  { %v230_v23 = vadd.f32 %v227_v27, %v212_v20 }
 0x138   :  { %v243_v58 = vpop.permute.xlu1 %242  ;;  %v241_v59 = vpop.permute.xlu0 %240 }
 0x139   :  { %v245_v22 = vsel %vm244_vm8, %v241_v59, %v243_v58  ;;  %v249_v44 = vadd.f32 %v243_v58, %v231_v43 }
 0x13a   :  { %v248_v30 = vadd.f32 %v245_v22, %v230_v23 }
 0x13c   :  { %v261_v63 = vpop.permute.xlu1 %260  ;;  %v259_v0 = vpop.permute.xlu0 %258 }
 0x13d   :  { %v263_v25 = vsel %vm262_vm9, %v259_v0, %v261_v63  ;;  %v267_v50 = vadd.f32 %v261_v63, %v249_v44 }
 0x13e   :  { %v266_v33 = vadd.f32 %v263_v25, %v248_v30 }
 0x140   :  { %v279_v6 = vpop.permute.xlu1 %278  ;;  %v277_v28 = vpop.permute.xlu0 %276 }
 0x141   :  { %v281_v32 = vsel %vm280_vm10, %v277_v28, %v279_v6  ;;  %v285_v47 = vadd.f32 %v279_v6, %v267_v50 }
 0x142   :  { %v284_v37 = vadd.f32 %v281_v32, %v266_v33 }
 0x144   :  { %v308_v12 = vpop.permute.xlu1 %307  ;;  %v293_v13 = vpop.permute.xlu0 %292 }
 0x145   :  { %v295_v42 = vadd.f32 %v293_v13, %v284_v37  ;;  %v296_v57 = vadd.f32 %v293_v13, %v285_v47 }
 0x147   :  { %v315_v48 = vadd.f32 %v308_v12, %v295_v42 }
 0x148   :  { %v326_v18 = vpop.permute.xlu1 %325  ;;  %v310_v19 = vpop.permute.xlu0 %309 }
 0x149   :  { %v333_v54 = vadd.f32 %v326_v18, %v315_v48  ;;  %v312_v56 = vsel %vm311_vm11, %v308_v12, %v310_v19 }
 0x14a   :  { %v316_v59 = vadd.f32 %v312_v56, %v296_v57 }
 0x14c   :  { %v344_v26 = vpop.permute.xlu1 %343  ;;  %v328_v29 = vpop.permute.xlu0 %327 }
 0x14d   :  { %v351_v51 = vadd.f32 %v344_v26, %v333_v54  ;;  %v330_v53 = vsel %vm329_vm12, %v326_v18, %v328_v29 }
 0x14e   :  { %v334_v62 = vadd.f32 %v330_v53, %v316_v59 }
 0x150   :  { %v362_v35 = vpop.permute.xlu1 %361  ;;  %v346_v36 = vpop.permute.xlu0 %345 }
 0x151   :  { %v369_v58 = vadd.f32 %v362_v35, %v351_v51  ;;  %v348_v61 = vsel %vm347_vm13, %v344_v26, %v346_v36 }
 0x152   :  { %v352_v1 = vadd.f32 %v348_v61, %v334_v62 }
 0x154   :  { %v380_v40 = vpop.permute.xlu1 %379  ;;  %v364_v41 = vpop.permute.xlu0 %363 }
 0x155   :  { %v387_v63 = vadd.f32 %v380_v40, %v369_v58  ;;  %v366_v0 = vsel %vm365_vm14, %v362_v35, %v364_v41 }
 0x156   :  { %v370_v6 = vadd.f32 %v366_v0, %v352_v1 }
 0x158   :  { %v398_v45 = vpop.permute.xlu1 %397  ;;  %v382_v46 = vpop.permute.xlu0 %381 }
 0x159   :  { %v405_v4 = vadd.f32 %v398_v45, %v387_v63  ;;  %v384_v5 = vsel %vm383_vm15, %v380_v40, %v382_v46 }
 0x15a   :  { %v388_v8 = vadd.f32 %v384_v5, %v370_v6 }
 0x15c   :  { %v416_v52 = vpop.permute.xlu1 %415  ;;  %v400_v49 = vpop.permute.xlu0 %399 }
 0x15d   :  { %v423_v28 = vadd.f32 %v416_v52, %v405_v4  ;;  %v402_v7 = vsel %vm401_vm0, %v398_v45, %v400_v49 }
 0x15e   :  { %v406_v13 = vadd.f32 %v402_v7, %v388_v8 }
 0x160   :  { %v434_v60 = vpop.permute.xlu1 %433  ;;  %v418_v55 = vpop.permute.xlu0 %417 }
 0x161   :  { %v441_v11 = vadd.f32 %v434_v60, %v423_v28  ;;  %v420_v12 = vsel %vm419_vm1, %v416_v52, %v418_v55 }
 0x162   :  { %v424_v16 = vadd.f32 %v420_v12, %v406_v13 }
 0x164   :  { %v452_v2 = vpop.permute.xlu1 %451  ;;  %v436_v3 = vpop.permute.xlu0 %435 }
 0x165   :  { %v459_v14 = vadd.f32 %v452_v2, %v441_v11  ;;  %v438_v15 = vsel %vm437_vm2, %v434_v60, %v436_v3 }
 0x166   :  { %v442_v20 = vadd.f32 %v438_v15, %v424_v16 }
 0x168   :  { %v470_v9 = vpop.permute.xlu1 %469  ;;  %v454_v10 = vpop.permute.xlu0 %453 }
 0x169   :  { %v477_v18 = vadd.f32 %v470_v9, %v459_v14  ;;  %v456_v19 = vsel %vm455_vm3, %v452_v2, %v454_v10 }
 0x16a   :  { %v460_v23 = vadd.f32 %v456_v19, %v442_v20 }
 0x16c   :  { %v488_v17 = vpop.permute.xlu1 %487  ;;  %v472_v27 = vpop.permute.xlu0 %471 }
 0x16d   :  { %v495_v21 = vadd.f32 %v488_v17, %v477_v18  ;;  %v474_v22 = vsel %vm473_vm4, %v470_v9, %v472_v27 }
 0x16e   :  { %v478_v30 = vadd.f32 %v474_v22, %v460_v23 }
 0x170   :  { %v506_v24 = vpop.permute.xlu1 %505  ;;  %v490_v25 = vpop.permute.xlu0 %489 }
 0x171   :  { %v513_v26 = vadd.f32 %v506_v24, %v495_v21  ;;  %v492_v29 = vsel %vm491_vm5, %v488_v17, %v490_v25 }
 0x172   :  { %v496_v31 = vadd.f32 %v492_v29, %v478_v30 }
 0x173   :  { %517 = vrot.lane.b32.xlu1 %v513_v26, %s766_s7 }
 0x174   :  { %v508_v32 = vpop.permute.xlu0 %507 }
 0x175   :  { %v510_v33 = vsel %vm509_vm6, %v506_v24, %v508_v32 }
 0x176   :  { %v514_v34 = vadd.f32 %v510_v33, %v496_v31 }
 0x178   :  { %519 = vrot.lane.b32.xlu0 %v514_v34, %s766_s7 }
 0x1e5   :  { %v518_v35 = vpop.permute.xlu1 %517 }
 0x1ea   :  { %v520_v36 = vpop.permute.xlu0 %519 }
 0x1eb   :  { %v522_v37 = vsel %vm521_vm7, %v518_v35, %v520_v36 }
 0x1ec   :  { %524 = vst [vmem:[#allocation9] sm:$0xff] %v522_v37 }
 0x1ed   :  { %699 = shalt.err (!%p696_p5)
}
 0x1ee   :  { %534 = dma.vmem_to_hbm [thread:$0]  %s532_s1, 128, %s907_s5, [#allocation5]  }
 0x1ef   :  { %712 = dma.done.wait [#allocation5], 128  }
 0x1f0   :  { %713 = vsyncadd [#allocation5], 4294967168 }
 0x1f1   :  { %538 = vsyncpa [#allocation4], 1 }
 0x1f2   :  { %539 = vsyncpa [#allocation7], 1 }
 0x1f3   :  { %540 = vsyncpa [#allocation5], 1 }

</bundles_post_ra>
